<compile_context>
chip_gen: v5e
topology: v5e:2x2
jax: 0.10.0
libtpu: 0.0.40
codegen_flags: <defaults>
</compile_context>

<pallas_src>
import jax
import jax.numpy as jnp
from jax.experimental import pallas as pl
from jax.experimental.pallas import tpu as pltpu


def viterbinet_deeper_kernel(x_ref,
                             w1_ref, b1_ref,
                             w2_ref, b2_ref,
                             w3_ref, b3_ref,
                             w4_ref, b4_ref,
                             o_ref):
    """Fused forward pass for one lane-dense batch tile.

    Shapes inside the kernel (batch on the 128-lane axis):
      x_ref  : (D_in,  TB)    -- one batch tile, features on sublanes
      wK_ref : (H_out, H_in)  -- PyTorch Linear layout (out, in)
      bK_ref : (H_out, 1)     -- broadcasts along the lane/batch axis
      o_ref  : (D_out, TB)    -- lane-dense output tile
    Every matmul is (H_out, H_in) @ (H_in, TB): MXU N dim = TB = 128-multiple.
    """
    mm_dtype = w2_ref.dtype  # bf16 if the caller requested a bf16 MXU path

    # fc1 -> tanh   (f32 accumulation; activations stay f32 on all chips)
    h = jnp.dot(w1_ref[...], x_ref[...],
                preferred_element_type=jnp.float32) + b1_ref[...]
    h = jnp.tanh(h)

    # fc2 -> relu
    h = jnp.dot(w2_ref[...], h.astype(mm_dtype),
                preferred_element_type=jnp.float32) + b2_ref[...]
    h = jnp.maximum(h, 0.0)

    # fc3 -> relu
    h = jnp.dot(w3_ref[...], h.astype(mm_dtype),
                preferred_element_type=jnp.float32) + b3_ref[...]
    h = jnp.maximum(h, 0.0)

    # fc4 -> log_softmax over the class axis (sublane axis in this layout)
    logits = jnp.dot(w4_ref[...], h.astype(mm_dtype),
                     preferred_element_type=jnp.float32) + b4_ref[...]
    m = jnp.max(logits, axis=0, keepdims=True)
    shifted = logits - m
    lse = jnp.log(jnp.sum(jnp.exp(shifted), axis=0, keepdims=True))
    o_ref[...] = (shifted - lse).astype(o_ref.dtype)


def viterbinet_deeper_forward(x, params, *, batch_tile=512, compute_dtype=None):
    """Forward pass of ViterbiNetDeeper (eval mode: dropout == identity).

    x:      (B, D_in) float32
    params: PyTorch-layout weights wK (out, in) and biases bK (out,)
    batch_tile: rows per grid step; must be a multiple of 128 (lane width).
    compute_dtype: optional dtype (e.g. jnp.bfloat16) for MXU inputs only.
    """
    B, D_in = x.shape
    w1, w2, w3, w4 = params["w1"], params["w2"], params["w3"], params["w4"]
    b1, b2, b3, b4 = params["b1"], params["b2"], params["b3"], params["b4"]
    D_out = w4.shape[0]

    tb = int(batch_tile)
    assert tb % 128 == 0, "batch_tile must be a multiple of 128 (lane width)"
    B_pad = pl.cdiv(B, tb) * tb
    grid = (B_pad // tb,)

    # Transpose so batch sits on the lane axis; zero-pad batch to tile multiple.
    x_t = jnp.pad(x, ((0, B_pad - B), (0, 0))).T  # (D_in, B_pad)

    if compute_dtype is not None:
        x_t = x_t.astype(compute_dtype)
        w1, w2, w3, w4 = (w.astype(compute_dtype) for w in (w1, w2, w3, w4))
    # Biases stay f32: the accumulation / elementwise path is f32 everywhere.
    b1, b2, b3, b4 = (b.reshape(-1, 1).astype(jnp.float32)
                      for b in (b1, b2, b3, b4))

    def resident(arr):
        # Whole (tiny) array, same block at every grid step -> fetched once.
        return pl.BlockSpec(arr.shape, lambda i: (0, 0))

    out_t = pl.pallas_call(
        viterbinet_deeper_kernel,
        out_shape=jax.ShapeDtypeStruct((D_out, B_pad), jnp.float32),
        grid=grid,
        in_specs=[
            pl.BlockSpec((D_in, tb), lambda i: (0, i)),   # lane-dense x tile
            resident(w1), resident(b1),
            resident(w2), resident(b2),
            resident(w3), resident(b3),
            resident(w4), resident(b4),
        ],
        out_specs=pl.BlockSpec((D_out, tb), lambda i: (0, i)),  # lane-dense out
        compiler_params=pltpu.CompilerParams(
            dimension_semantics=("parallel",)),
    )(x_t, w1, b1, w2, b2, w3, b3, w4, b4)

    # Back to PyTorch orientation, drop the batch padding (wrapper-side only).
    return out_t.T[:B]


def init_params(key, D_in, H1, H2, H3, D_out, dtype=jnp.float32):
    """PyTorch nn.Linear default init; weights kept in (out, in) layout."""
    dims = [(D_in, H1), (H1, H2), (H2, H3), (H3, D_out)]
    params = {}
    keys = jax.random.split(key, 2 * len(dims))
    for idx, (fan_in, fan_out) in enumerate(dims):
        bound = 1.0 / float(fan_in) ** 0.5
        w = jax.random.uniform(keys[2 * idx], (fan_out, fan_in),
                               minval=-bound, maxval=bound, dtype=dtype)
        b = jax.random.uniform(keys[2 * idx + 1], (fan_out,),
                               minval=-bound, maxval=bound, dtype=dtype)
        params[f"w{idx + 1}"] = w
        params[f"b{idx + 1}"] = b
    return params


def reference_forward(x, params):
    """Pure-JAX reference in PyTorch orientation (x @ W.T + b)."""
    h = jnp.tanh(x @ params["w1"].T + params["b1"])
    h = jnp.maximum(h @ params["w2"].T + params["b2"], 0.0)
    h = jnp.maximum(h @ params["w3"].T + params["b3"], 0.0)
    logits = h @ params["w4"].T + params["b4"]
    return jax.nn.log_softmax(logits, axis=-1)


if __name__ == "__main__":
    # ViterbiNet-style sizes: D_in=4 observation window, hidden 32/64/32,
    # D_out=16 trellis states.  Batch is the only large dimension and is the
    # one that lives on the lane axis; B=1000 exercises batch padding (->1024)
    # and a 4-step "parallel" grid (pipelined, both TCs on v7x).
    B, D_in, H1, H2, H3, D_out = 1000, 4, 32, 64, 32, 16
    dropout_probability = 0.0  # inference-mode: identity

    key = jax.random.PRNGKey(0)
    k_x, k_p = jax.random.split(key)
    x = jax.random.normal(k_x, (B, D_in), dtype=jnp.float32)
    params = init_params(k_p, D_in, H1, H2, H3, D_out)

    out = viterbinet_deeper_forward(x, params, batch_tile=256)
    out = jax.block_until_ready(out)

    ref = reference_forward(x, params)
    assert out.shape == (B, D_out)
    assert jnp.allclose(out, ref, atol=1e-4, rtol=1e-5), "mismatch vs reference"

    print("KERNEL_OK")
</pallas_src>

<mosaic_0001>
module attributes {stable_mosaic.version = 11 : i64} {
  func.func @viterbinet_deeper_kernel(%arg0: i32, %arg1: memref<4x256xf32, #tpu.memory_space<vmem>>, %arg2: memref<32x4xf32, #tpu.memory_space<vmem>>, %arg3: memref<32x1xf32, #tpu.memory_space<vmem>>, %arg4: memref<64x32xf32, #tpu.memory_space<vmem>>, %arg5: memref<64x1xf32, #tpu.memory_space<vmem>>, %arg6: memref<32x64xf32, #tpu.memory_space<vmem>>, %arg7: memref<32x1xf32, #tpu.memory_space<vmem>>, %arg8: memref<16x32xf32, #tpu.memory_space<vmem>>, %arg9: memref<16x1xf32, #tpu.memory_space<vmem>>, %arg10: memref<16x256xf32, #tpu.memory_space<vmem>>) attributes {dimension_semantics = [#tpu.dimension_semantics<parallel>], iteration_bounds = array<i64: 4>, scalar_prefetch = 0 : i64, scratch_operands = 0 : i64, tpu.core_type = #tpu.core_type<tc>, window_params = [{transform_indices = @transform_0, window_bounds = array<i64: 4, 256>}, {pipeline_mode = #tpu.pipeline_mode<synchronous>, transform_indices = @transform_1, window_bounds = array<i64: 32, 4>}, {pipeline_mode = #tpu.pipeline_mode<synchronous>, transform_indices = @transform_2, window_bounds = array<i64: 32, 1>}, {pipeline_mode = #tpu.pipeline_mode<synchronous>, transform_indices = @transform_3, window_bounds = array<i64: 64, 32>}, {pipeline_mode = #tpu.pipeline_mode<synchronous>, transform_indices = @transform_4, window_bounds = array<i64: 64, 1>}, {pipeline_mode = #tpu.pipeline_mode<synchronous>, transform_indices = @transform_5, window_bounds = array<i64: 32, 64>}, {pipeline_mode = #tpu.pipeline_mode<synchronous>, transform_indices = @transform_6, window_bounds = array<i64: 32, 1>}, {pipeline_mode = #tpu.pipeline_mode<synchronous>, transform_indices = @transform_7, window_bounds = array<i64: 16, 32>}, {pipeline_mode = #tpu.pipeline_mode<synchronous>, transform_indices = @transform_8, window_bounds = array<i64: 16, 1>}, {transform_indices = @transform_9, window_bounds = array<i64: 16, 256>}]} {
    %c0 = arith.constant 0 : index
    %c0_0 = arith.constant 0 : index
    %0 = vector.load %arg2[%c0, %c0_0] : memref<32x4xf32, #tpu.memory_space<vmem>>, vector<32x4xf32>
    %c0_1 = arith.constant 0 : index
    %c0_2 = arith.constant 0 : index
    %1 = vector.load %arg1[%c0_1, %c0_2] : memref<4x256xf32, #tpu.memory_space<vmem>>, vector<4x256xf32>
    %cst = arith.constant dense<0.000000e+00> : vector<32x256xf32>
    %2 = tpu.matmul %0, %1, %cst {dimension_numbers = #tpu.dot_dimension_numbers<[1], [0], [0], [1], [0, 0, 1, 1], [], []>} : vector<32x4xf32>, vector<4x256xf32>, vector<32x256xf32> -> vector<32x256xf32>
    %c0_3 = arith.constant 0 : index
    %c0_4 = arith.constant 0 : index
    %3 = vector.load %arg3[%c0_3, %c0_4] : memref<32x1xf32, #tpu.memory_space<vmem>>, vector<32x1xf32>
    %4 = vector.broadcast %3 : vector<32x1xf32> to vector<32x256xf32>
    %5 = arith.addf %2, %4 : vector<32x256xf32>
    %6 = math.tanh %5 : vector<32x256xf32>
    %c0_5 = arith.constant 0 : index
    %c0_6 = arith.constant 0 : index
    %7 = vector.load %arg4[%c0_5, %c0_6] : memref<64x32xf32, #tpu.memory_space<vmem>>, vector<64x32xf32>
    %cst_7 = arith.constant dense<0.000000e+00> : vector<64x256xf32>
    %8 = tpu.matmul %7, %6, %cst_7 {dimension_numbers = #tpu.dot_dimension_numbers<[1], [0], [0], [1], [0, 0, 1, 1], [], []>} : vector<64x32xf32>, vector<32x256xf32>, vector<64x256xf32> -> vector<64x256xf32>
    %c0_8 = arith.constant 0 : index
    %c0_9 = arith.constant 0 : index
    %9 = vector.load %arg5[%c0_8, %c0_9] : memref<64x1xf32, #tpu.memory_space<vmem>>, vector<64x1xf32>
    %10 = vector.broadcast %9 : vector<64x1xf32> to vector<64x256xf32>
    %11 = arith.addf %8, %10 : vector<64x256xf32>
    %cst_10 = arith.constant 0.000000e+00 : f32
    %12 = vector.broadcast %cst_10 : f32 to vector<64x256xf32>
    %13 = arith.maximumf %11, %12 : vector<64x256xf32>
    %c0_11 = arith.constant 0 : index
    %c0_12 = arith.constant 0 : index
    %14 = vector.load %arg6[%c0_11, %c0_12] : memref<32x64xf32, #tpu.memory_space<vmem>>, vector<32x64xf32>
    %cst_13 = arith.constant dense<0.000000e+00> : vector<32x256xf32>
    %15 = tpu.matmul %14, %13, %cst_13 {dimension_numbers = #tpu.dot_dimension_numbers<[1], [0], [0], [1], [0, 0, 1, 1], [], []>} : vector<32x64xf32>, vector<64x256xf32>, vector<32x256xf32> -> vector<32x256xf32>
    %c0_14 = arith.constant 0 : index
    %c0_15 = arith.constant 0 : index
    %16 = vector.load %arg7[%c0_14, %c0_15] : memref<32x1xf32, #tpu.memory_space<vmem>>, vector<32x1xf32>
    %17 = vector.broadcast %16 : vector<32x1xf32> to vector<32x256xf32>
    %18 = arith.addf %15, %17 : vector<32x256xf32>
    %cst_16 = arith.constant 0.000000e+00 : f32
    %19 = vector.broadcast %cst_16 : f32 to vector<32x256xf32>
    %20 = arith.maximumf %18, %19 : vector<32x256xf32>
    %c0_17 = arith.constant 0 : index
    %c0_18 = arith.constant 0 : index
    %21 = vector.load %arg8[%c0_17, %c0_18] : memref<16x32xf32, #tpu.memory_space<vmem>>, vector<16x32xf32>
    %cst_19 = arith.constant dense<0.000000e+00> : vector<16x256xf32>
    %22 = tpu.matmul %21, %20, %cst_19 {dimension_numbers = #tpu.dot_dimension_numbers<[1], [0], [0], [1], [0, 0, 1, 1], [], []>} : vector<16x32xf32>, vector<32x256xf32>, vector<16x256xf32> -> vector<16x256xf32>
    %c0_20 = arith.constant 0 : index
    %c0_21 = arith.constant 0 : index
    %23 = vector.load %arg9[%c0_20, %c0_21] : memref<16x1xf32, #tpu.memory_space<vmem>>, vector<16x1xf32>
    %24 = vector.broadcast %23 : vector<16x1xf32> to vector<16x256xf32>
    %25 = arith.addf %22, %24 : vector<16x256xf32>
    %cst_22 = arith.constant dense<0xFF800000> : vector<256xf32>
    %26 = vector.multi_reduction <maximumf>, %25, %cst_22 [0] : vector<16x256xf32> to vector<256xf32>
    %27 = vector.shape_cast %26 : vector<256xf32> to vector<1x256xf32>
    %28 = vector.broadcast %27 : vector<1x256xf32> to vector<16x256xf32>
    %29 = arith.subf %25, %28 : vector<16x256xf32>
    %30 = math.exp %29 : vector<16x256xf32>
    %cst_23 = arith.constant dense<0.000000e+00> : vector<256xf32>
    %31 = vector.multi_reduction <add>, %30, %cst_23 [0] : vector<16x256xf32> to vector<256xf32>
    %32 = vector.shape_cast %31 : vector<256xf32> to vector<1x256xf32>
    %33 = math.log %32 : vector<1x256xf32>
    %34 = vector.broadcast %33 : vector<1x256xf32> to vector<16x256xf32>
    %35 = arith.subf %29, %34 : vector<16x256xf32>
    %c0_24 = arith.constant 0 : index
    %c0_25 = arith.constant 0 : index
    %36 = vector.load %arg10[%c0_24, %c0_25] : memref<16x256xf32, #tpu.memory_space<vmem>>, vector<16x256xf32>
    tpu.vector_store %arg10[%c0_24, %c0_25], %35 {strides = array<i32>} : memref<16x256xf32, #tpu.memory_space<vmem>>, vector<16x256xf32>,
    return
  }
  func.func @transform_0(%arg0: i32) -> (i32, i32) {
    %c0_i32 = arith.constant 0 : i32
    %c0_i32_0 = arith.constant 0 : i32
    return %c0_i32, %arg0 : i32, i32
  }
  func.func @transform_1(%arg0: i32) -> (i32, i32) {
    %c0_i32 = arith.constant 0 : i32
    %c0_i32_0 = arith.constant 0 : i32
    %c0_i32_1 = arith.constant 0 : i32
    return %c0_i32, %c0_i32_0 : i32, i32
  }
  func.func @transform_2(%arg0: i32) -> (i32, i32) {
    %c0_i32 = arith.constant 0 : i32
    %c0_i32_0 = arith.constant 0 : i32
    %c0_i32_1 = arith.constant 0 : i32
    return %c0_i32, %c0_i32_0 : i32, i32
  }
  func.func @transform_3(%arg0: i32) -> (i32, i32) {
    %c0_i32 = arith.constant 0 : i32
    %c0_i32_0 = arith.constant 0 : i32
    %c0_i32_1 = arith.constant 0 : i32
    return %c0_i32, %c0_i32_0 : i32, i32
  }
  func.func @transform_4(%arg0: i32) -> (i32, i32) {
    %c0_i32 = arith.constant 0 : i32
    %c0_i32_0 = arith.constant 0 : i32
    %c0_i32_1 = arith.constant 0 : i32
    return %c0_i32, %c0_i32_0 : i32, i32
  }
  func.func @transform_5(%arg0: i32) -> (i32, i32) {
    %c0_i32 = arith.constant 0 : i32
    %c0_i32_0 = arith.constant 0 : i32
    %c0_i32_1 = arith.constant 0 : i32
    return %c0_i32, %c0_i32_0 : i32, i32
  }
  func.func @transform_6(%arg0: i32) -> (i32, i32) {
    %c0_i32 = arith.constant 0 : i32
    %c0_i32_0 = arith.constant 0 : i32
    %c0_i32_1 = arith.constant 0 : i32
    return %c0_i32, %c0_i32_0 : i32, i32
  }
  func.func @transform_7(%arg0: i32) -> (i32, i32) {
    %c0_i32 = arith.constant 0 : i32
    %c0_i32_0 = arith.constant 0 : i32
    %c0_i32_1 = arith.constant 0 : i32
    return %c0_i32, %c0_i32_0 : i32, i32
  }
  func.func @transform_8(%arg0: i32) -> (i32, i32) {
    %c0_i32 = arith.constant 0 : i32
    %c0_i32_0 = arith.constant 0 : i32
    %c0_i32_1 = arith.constant 0 : i32
    return %c0_i32, %c0_i32_0 : i32, i32
  }
  func.func @transform_9(%arg0: i32) -> (i32, i32) {
    %c0_i32 = arith.constant 0 : i32
    %c0_i32_0 = arith.constant 0 : i32
    return %c0_i32, %arg0 : i32, i32
  }
}

</mosaic_0001>

<bundles_post_ra>
// kernel: tpu_custom_call.1
= control target key start
LH: loop header
LB: loop body
LE: loop exit
PB: predicated region body
PF: predicated region fallthrough
CT: control target
= control target key end

     0   :  { %14 = vsyncpa [#allocation3], 0  ;;  %s1404_s0 = inlined_call_operand.vmem [shape: f32[4,1024], index: 0, kind: input, shape index: {}]   ;;  %s1405_s1 = inlined_call_operand.vmem [shape: f32[32,4], index: 1, kind: input, shape index: {}]   ;;  %s1406_s2 = inlined_call_operand.vmem [shape: f32[32,1], index: 2, kind: input, shape index: {}]   ;;  %s1407_s3 = inlined_call_operand.vmem [shape: f32[64,32], index: 3, kind: input, shape index: {}]   ;;  %s1408_s4 = inlined_call_operand.vmem [shape: f32[64,1], index: 4, kind: input, shape index: {}]   ;;  %s1409_s5 = inlined_call_operand.vmem [shape: f32[32,64], index: 5, kind: input, shape index: {}]   ;;  %s1410_s6 = inlined_call_operand.vmem [shape: f32[32,1], index: 6, kind: input, shape index: {}]   ;;  %s1411_s7 = inlined_call_operand.vmem [shape: f32[16,32], index: 7, kind: input, shape index: {}]   ;;  %s1412_s8 = inlined_call_operand.vmem [shape: f32[16,1], index: 8, kind: input, shape index: {}]   ;;  %s1413_s9 = inlined_call_operand.hbm [shape: f32[16,1024], index: 9, kind: output, shape index: {}]  }
   0x1   :  { %16 = vsyncpa [#allocation3 + $0x1], 0  ;;  %s1184_s30 = smov 0   ;;  %s1186_s10 = smov 0  }
   0x2   :  { %s1188_s11 = smov 0   ;;  %s1190_s12 = smov 0  }
   0x3 LB: > { %s1205_s13 = sadd.s32 4294967295, %s1128_s12   ;;  %s933_s14 = sadd.s32 4294967294, %s1128_s12   ;;  %s1128_s12 = sphi %s1190_s12, %s1419_s12   ;;  %s1124_s11 = sphi %s1188_s11, %s1418_s11   ;;  %s1120_s10 = sphi %s1186_s10, %s1417_s10   ;;  %s1116_s30 = sphi %s1184_s30, %s1416_s30  }
   0x4   : > { %s1209_s15 = sadd.s32 1, %s1128_s12   ;;  %s223_s16 = sadd.s32 1, %s1124_s11 }
   0x5   : > { %s220_s17 = ssub.s32 %s1128_s12, %s1209_s15  ;;  %p233_p0 = scmp.ne.s32.totalorder %s1124_s11, %s1120_s10 }
   0x6   : > { %p221_p1 = scmp.eq.s32.totalorder %s220_s17, 0  ;;  %p234_p2 = scmp.eq.s32.totalorder %s1205_s13, 3 }
   0x7   : > { %p239_p3 = scmp.ne.s32.totalorder %s1120_s10, %s1116_s30  ;;  %p240_p4 = scmp.eq.s32.totalorder %s933_s14, 3 }
   0x8   : > { %s1220_s18 = scalar_select %p221_p1, %s1124_s11, %s223_s16  }
   0x9   : > { %p1222_p5 = por %p234_p2, %p233_p0  ;;  %p1226_p6 = por %p240_p4, %p239_p3 }
   0xa   : > { %p936_p7 = scmp.ge.s32.totalorder %s1128_s12, 1  ;;  %p291_p8 = scmp.lt.s32.totalorder %s1128_s12, 5 }
   0xc   : > { %p292_p9 = pnand %p936_p7, %p291_p8 }
   0xd   : > { %s938_s25 = sshll.u32 (!%p292_p9), %s1205_s13, 1  ;;  %s983_s28 = sshll.u32 (!%p292_p9), %s1205_s13, 4 }
   0xe   : > { %295 = sbr.rel (%p292_p9) target bundleno = 760 (0x2f8), region = 56  ;;  %p328_p10 = scmp.lt.s32.totalorder (!%p292_p9), %s938_s25, 7 }
   0xf   : > { %s867_s16 = scalar_lea.hbm (!%p292_p9), %s1413_s9, %s983_s28  ;;  %s1086_s28 = scalar_lea.hbm (!%p292_p9), %s1413_s9, 128 }
  0x10   : > { %s870_s22 = sshll.u32 (!%p292_p9), %s867_s16, 4  ;;  %s871_s22 = int_to_ptr.hbm [resolvable:$true] %s870_s22 }
  0x11   : > { %s1080_s23 = sshra.s32 (!%p292_p9), %s871_s22, 4  ;;  %s1081_s23 = int_to_ptr.hbm [resolvable:$true] %s1080_s23 }
  0x12   : > { %s1082_s24 = scalar_lea.hbm (!%p292_p9), %s1081_s23, 32  ;;  %p1087_p0 = scmp.lt.s32.totalorder (!%p292_p9), %s1081_s23, %s1413_s9 }
  0x13   : > { %v342_v0 = vld [vmem:[%s1406_s2 + $0x18] sm:$0xff]  ;;  %v340_v1 = vld [vmem:[%s1406_s2 + $0x8] sm:$0xff]  ;;  %v1130_v2 = vmov 0   ;;  %s1421_s25 = smov (!%p328_p10, %s938_s25), 7  ;;  %v341_v3 = vld [vmem:[%s1406_s2 + $0x10] sm:$0xff]  ;;  %vm380_vm0 = vcmask 1043456   ;;  %p1083_p11 = scmp.ne.s32.totalorder %s1081_s23, %s1082_s24 }
  0x14   : > { %1035 = vset.pattern.permute.xlu0 %v1130_v2  ;;  %1036 = vset.pattern.permute.xlu1 %v1130_v2  ;;  %s939_s26 = sshll.u32 %s1421_s25, 2  ;;  %v339_v5 = vld [vmem:[%s1406_s2] sm:$0xff]  ;;  %vm367_vm1 = vcmask 31744   ;;  %v464_v7 = vld [vmem:[%s1408_s4 + $0x28] sm:$0xff]  ;;  %v461_v12 = vld [vmem:[%s1408_s4 + $0x10] sm:$0xff]  ;;  %vm507_vm2 = vcmask 261120   ;;  %p1088_p1 = scmp.lt.s32.totalorder %s1086_s28, %s1082_s24 }
  0x15   : > { %360 = vperm.xlu0 %1035, %v342_v0   ;;  %350 = vperm.xlu1 %1036, %v340_v1   ;;  %s331_s29 = scalar_lea.vmem %s1404_s0, %s939_s26  ;;  %v334_v6 = vld [vmem:[%s1405_s1] sm:$0xff]  ;;  %v335_v11 = vld [vmem:[%s1405_s1 + $0x8] sm:$0xff]  ;;  %v336_v14 = vld [vmem:[%s1405_s1 + $0x10] sm:$0xff]  ;;  %vm658_vm3 = vcmask 523264   ;;  %s324_s26 = sand.u32 1, %s1120_s10  }
  0x16   : > { %1037 = vset.pattern.permute.xlu2 %v1130_v2  ;;  %v338_v4 = vld [vmem:[%s331_s29] sm:$0xff]  ;;  %v460_v13 = vld [vmem:[%s1408_s4 + $0x8] sm:$0xff]  ;;  %v637_v15 = vld [vmem:[%s1410_s6 + $0x18] sm:$0xff]  ;;  %s937_s27 = sshll.u32 %s324_s26, 5  ;;  %s856_s13 = scalar_lea.sflag [#allocation3], %s324_s26 }
  0x17   : > { %364 = vst [vmem:[#allocation1] ss:$2 sm:$0xff] %v338_v4  ;;  %v463_v8 = vld [vmem:[%s1408_s4 + $0x20] sm:$0xff]  ;;  %v636_v16 = vld [vmem:[%s1410_s6 + $0x10] sm:$0xff]  ;;  %v337_v17 = vld [vmem:[%s1405_s1 + $0x18] sm:$0xff]  ;;  %s326_s17 = scalar_lea.vmem [#allocation2], %s937_s27  ;;  %p1084_p12 = pnand %p1083_p11, %p1222_p5 }
  0x18   : > { %v634_v18 = vld [vmem:[%s1410_s6] sm:$0xff]  ;;  %v466_v35 = vld [vmem:[%s1408_s4 + $0x38] sm:$0xff]  ;;  %v465_v43 = vld [vmem:[%s1408_s4 + $0x30] sm:$0xff]  ;;  %s868_s21 = sshll.u32 %s326_s17, 4  ;;  %p1089_p2 = por %p1088_p1, %p1087_p0  ;;  %s869_s21 = int_to_ptr.vmem [resolvable:$true] %s868_s21 }
  0x19   : > { %v739_v19 = vld [vmem:[%s1412_s8] sm:$0xff]  ;;  %504 = vperm.xlu2 %1037, %v466_v35   ;;  %v462_v51 = vld [vmem:[%s1408_s4 + $0x18] sm:$0xff]  ;;  %v452_v52 = vld [vmem:[%s1407_s3 + $0x8] sm:$0xff]  ;;  %p1085_p13 = pneg %p1084_p12 }
  0x1a   : > { %v451_v48 = vld [vmem:[%s1407_s3] sm:$0xff]  ;;  %v453_v54 = vld [vmem:[%s1407_s3 + $0x10] sm:$0xff]  ;;  %v454_v55 = vld [vmem:[%s1407_s3 + $0x18] sm:$0xff] }
  0x1b   : > { %v459_v53 = vld [vmem:[%s1408_s4] sm:$0xff]  ;;  %v635_v56 = vld [vmem:[%s1410_s6 + $0x8] sm:$0xff]  ;;  %v457_v60 = vld [vmem:[%s1407_s3 + $0x30] sm:$0xff]  ;;  %p1090_p3 = pnand %p1089_p2, %p1085_p13 }
  0x1c   : > { %v455_v57 = vld [vmem:[%s1407_s3 + $0x20] sm:$0xff]  ;;  %v740_v58 = vld [vmem:[%s1412_s8 + $0x8] sm:$0xff]  ;;  %v458_v61 = vld [vmem:[%s1407_s3 + $0x38] sm:$0xff] }
  0x1d   : > { %355 = vperm.xlu0 %1035, %v341_v3   ;;  %345 = vperm.xlu1 %1036, %v339_v5   ;;  %v456_v59 = vld [vmem:[%s1407_s3 + $0x28] sm:$0xff] }
  0x1e   : > { %v365_v9 = vld.sshfl [vmem:[#allocation1] sm:$0xff pattern:$0x75316420]  ;;  %v366_v10 = vld.sshfl [vmem:[#allocation1 + $0x8] sm:$0xff pattern:$0x75316420] }
  0x1f   : > { %940 = vmatpush.msk.msra.mxu0 %vm380_vm0, %v365_v9  ;;  %945 = vmatpush.msk.msra.mxu1 %vm380_vm0, %v366_v10 }
  0x20   : > { %941 = vmatmul.msk.f32.vlgmr.msra.gmra.mxu0 %vm367_vm1, %v334_v6  ;;  %946 = vmatmul.msk.f32.vlgmr.msra.gmra.mxu1 %vm367_vm1, %v334_v6 }
  0x21   : > { %499 = vperm.xlu2 %1037, %v465_v43  }
  0x25   : > { %494 = vperm.xlu0 %1035, %v464_v7   ;;  %489 = vperm.xlu1 %1036, %v463_v8  }
  0x28   : > { %942 = vmatmul.msk.f32.gmra.mxu0 %vm367_vm1, %v335_v11  ;;  %947 = vmatmul.msk.f32.gmra.mxu1 %vm367_vm1, %v335_v11 }
  0x29   : > { %484 = vperm.xlu2 %1037, %v462_v51  }
  0x2d   : > { %479 = vperm.xlu0 %1035, %v461_v12   ;;  %474 = vperm.xlu1 %1036, %v460_v13  }
  0x30   : > { %943 = vmatmul.msk.f32.gmra.mxu0 %vm367_vm1, %v336_v14  ;;  %948 = vmatmul.msk.f32.gmra.mxu1 %vm367_vm1, %v336_v14 }
  0x31   : > { %469 = vperm.xlu2 %1037, %v459_v53   ;;  %v630_v53 = vld [vmem:[%s1409_s5] sm:$0xff] }
  0x35   : > { %655 = vperm.xlu0 %1035, %v637_v15   ;;  %650 = vperm.xlu1 %1036, %v636_v16  }
  0x38   : > { %944 = vmatmul.msk.f32.gmra.mxu0 %vm367_vm1, %v337_v17  ;;  %949 = vmatmul.msk.f32.gmra.mxu1 %vm367_vm1, %v337_v17 }
  0x39   : > { %645 = vperm.xlu2 %1037, %v635_v56   ;;  %v632_v56 = vld [vmem:[%s1409_s5 + $0x10] sm:$0xff] }
  0x3d   : > { %640 = vperm.xlu0 %1035, %v634_v18   ;;  %743 = vperm.xlu1 %1036, %v739_v19  }
  0x41   : > { %748 = vperm.xlu2 %1037, %v740_v58  }
  0x73   : > { %v505_v8 = vpop.permute.xlu2 %504 }
  0x7b   : > { %v500_v11 = vpop.permute.xlu2 %499 }
  0x83   : > { %v485_v16 = vpop.permute.xlu2 %484 }
  0x87   : > { %v361_v24 = vpop.permute.xlu0 %360  ;;  %v351_v27 = vpop.permute.xlu1 %350 }
  0x8f   : > { %v356_v28 = vpop.permute.xlu0 %355  ;;  %v346_v37 = vpop.permute.xlu1 %345 }
  0x97   : > { %v495_v14 = vpop.permute.xlu0 %494  ;;  %v490_v15 = vpop.permute.xlu1 %489 }
  0x9d   : > { %v402_v20 = vpop.f32.mrf.mxu0  ;;  %v431_v21 = vpop.f32.mrf.mxu1 }
  0x9e   : > { %v403_v39 = vadd.f32 %v402_v20, %v346_v37  ;;  %v432_v40 = vadd.f32 %v431_v21, %v346_v37 }
  0xa5   : > { %v405_v22 = vpop.f32.mrf.mxu0  ;;  %v434_v23 = vpop.f32.mrf.mxu1 }
  0xa6   : > { %v406_v36 = vadd.f32 %v405_v22, %v351_v27  ;;  %v435_v38 = vadd.f32 %v434_v23, %v351_v27 }
  0xad   : > { %v408_v25 = vpop.f32.mrf.mxu0  ;;  %v437_v26 = vpop.f32.mrf.mxu1 }
  0xae   : > { %v409_v31 = vadd.f32 %v408_v25, %v356_v28  ;;  %v438_v34 = vadd.f32 %v437_v26, %v356_v28 }
  0xb5   : > { %v411_v29 = vpop.f32.mrf.mxu0  ;;  %v440_v30 = vpop.f32.mrf.mxu1 }
  0xb6   : > { %v412_v32 = vadd.f32 %v411_v29, %v361_v24  ;;  %v441_v33 = vadd.f32 %v440_v30, %v361_v24 }
  0xb8   : > { %1038 = vtanh.f32 %v412_v32 }
  0xb9   : > { %1040 = vtanh.f32 %v441_v33  ;;  %v480_v33 = vpop.permute.xlu0 %479 }
  0xba   : > { %1042 = vtanh.f32 %v409_v31 }
  0xbb   : > { %1044 = vtanh.f32 %v438_v34 }
  0xbc   : > { %1046 = vtanh.f32 %v406_v36 }
  0xbd   : > { %1048 = vtanh.f32 %v435_v38  ;;  %v475_v38 = vpop.permute.xlu1 %474 }
  0xbe   : > { %v1039_v41 = vpop.eup %1038  ;;  %1050 = vtanh.f32 %v403_v39  ;;  %v470_v39 = vpop.permute.xlu2 %469 }
  0xbf   : > { %v1041_v42 = vpop.eup %1040  ;;  %1052 = vtanh.f32 %v432_v40  ;;  %544 = vmatpush.msra.mxu2 %v1039_v41 }
  0xc0   : > { %v1043_v44 = vpop.eup %1042  ;;  %585 = vmatpush.msra.mxu3 %v1041_v42 }
  0xc1   : > { %v1045_v45 = vpop.eup %1044  ;;  %545 = vmatpush.msra.mxu2 %v1043_v44 }
  0xc2   : > { %v1047_v46 = vpop.eup %1046  ;;  %586 = vmatpush.msra.mxu3 %v1045_v45 }
  0xc3   : > { %v1049_v47 = vpop.eup %1048  ;;  %546 = vmatpush.msra.mxu2 %v1047_v46 }
  0xc4   : > { %v1051_v49 = vpop.eup %1050  ;;  %587 = vmatpush.msra.mxu3 %v1049_v47 }
  0xc5   : > { %v1053_v50 = vpop.eup %1052  ;;  %547 = vmatpush.msra.mxu2 %v1051_v49 }
  0xc6   : > { %588 = vmatpush.msra.mxu3 %v1053_v50  ;;  %950 = vmatmul.msk.f32.vlgmr.msra.gmra.mxu2 %vm507_vm2, %v451_v48 }
  0xc7   : > { %958 = vmatmul.msk.f32.vlgmr.msra.gmra.mxu3 %vm507_vm2, %v451_v48 }
  0xce   : > { %951 = vmatmul.msk.f32.gmra.mxu2 %vm507_vm2, %v452_v52 }
  0xcf   : > { %959 = vmatmul.msk.f32.gmra.mxu3 %vm507_vm2, %v452_v52 }
  0xd6   : > { %952 = vmatmul.msk.f32.gmra.mxu2 %vm507_vm2, %v453_v54 }
  0xd7   : > { %960 = vmatmul.msk.f32.gmra.mxu3 %vm507_vm2, %v453_v54 }
  0xde   : > { %953 = vmatmul.msk.f32.gmra.mxu2 %vm507_vm2, %v454_v55 }
  0xdf   : > { %961 = vmatmul.msk.f32.gmra.mxu3 %vm507_vm2, %v454_v55  ;;  %v631_v55 = vld [vmem:[%s1409_s5 + $0x8] sm:$0xff] }
  0xe6   : > { %954 = vmatmul.msk.f32.gmra.mxu2 %vm507_vm2, %v455_v57 }
  0xe7   : > { %962 = vmatmul.msk.f32.gmra.mxu3 %vm507_vm2, %v455_v57  ;;  %v633_v57 = vld [vmem:[%s1409_s5 + $0x18] sm:$0xff] }
  0xee   : > { %955 = vmatmul.msk.f32.gmra.mxu2 %vm507_vm2, %v456_v59 }
  0xef   : > { %963 = vmatmul.msk.f32.gmra.mxu3 %vm507_vm2, %v456_v59 }
  0xf6   : > { %956 = vmatmul.msk.f32.gmra.mxu2 %vm507_vm2, %v457_v60 }
  0xf7   : > { %964 = vmatmul.msk.f32.gmra.mxu3 %vm507_vm2, %v457_v60 }
  0xfe   : > { %957 = vmatmul.msk.f32.gmra.mxu2 %vm507_vm2, %v458_v61 }
  0xff   : > { %965 = vmatmul.msk.f32.gmra.mxu3 %vm507_vm2, %v458_v61 }
 0x149   : > { %v549_v62 = vpop.f32.mrf.mxu2 }
 0x14a   : > { %v590_v63 = vpop.f32.mrf.mxu3  ;;  %v550_v46 = vadd.f32 %v549_v62, %v470_v39 }
 0x14b   : > { %v591_v48 = vadd.f32 %v590_v63, %v470_v39 }
 0x14c   : > { %v614_v52 = vmax.f32 %v550_v46, 0.0 }
 0x14d   : > { %v615_v54 = vmax.f32 %v591_v48, 0.0 }
 0x151   : > { %v552_v0 = vpop.f32.mrf.mxu2 }
 0x152   : > { %v593_v1 = vpop.f32.mrf.mxu3  ;;  %v553_v42 = vadd.f32 %v552_v0, %v475_v38  ;;  %v656_v0 = vpop.permute.xlu0 %655 }
 0x153   : > { %v594_v44 = vadd.f32 %v593_v1, %v475_v38  ;;  %v651_v1 = vpop.permute.xlu1 %650 }
 0x154   : > { %v616_v50 = vmax.f32 %v553_v42, 0.0 }
 0x155   : > { %v617_v51 = vmax.f32 %v594_v44, 0.0 }
 0x159   : > { %v555_v2 = vpop.f32.mrf.mxu2 }
 0x15a   : > { %v596_v3 = vpop.f32.mrf.mxu3  ;;  %v556_v36 = vadd.f32 %v555_v2, %v480_v33 }
 0x15b   : > { %v597_v40 = vadd.f32 %v596_v3, %v480_v33 }
 0x15c   : > { %v618_v47 = vmax.f32 %v556_v36, 0.0 }
 0x15d   : > { %v619_v49 = vmax.f32 %v597_v40, 0.0 }
 0x161   : > { %v558_v4 = vpop.f32.mrf.mxu2 }
 0x162   : > { %v599_v5 = vpop.f32.mrf.mxu3  ;;  %v559_v31 = vadd.f32 %v558_v4, %v485_v16 }
 0x163   : > { %v600_v34 = vadd.f32 %v599_v5, %v485_v16 }
 0x164   : > { %v620_v43 = vmax.f32 %v559_v31, 0.0 }
 0x165   : > { %v621_v45 = vmax.f32 %v600_v34, 0.0 }
 0x169   : > { %v561_v6 = vpop.f32.mrf.mxu2 }
 0x16a   : > { %v602_v7 = vpop.f32.mrf.mxu3  ;;  %v562_v27 = vadd.f32 %v561_v6, %v490_v15  ;;  %v646_v6 = vpop.permute.xlu2 %645 }
 0x16b   : > { %v603_v29 = vadd.f32 %v602_v7, %v490_v15 }
 0x16c   : > { %v622_v37 = vmax.f32 %v562_v27, 0.0 }
 0x16d   : > { %v623_v41 = vmax.f32 %v603_v29, 0.0 }
 0x171   : > { %v564_v9 = vpop.f32.mrf.mxu2 }
 0x172   : > { %v605_v10 = vpop.f32.mrf.mxu3  ;;  %v565_v23 = vadd.f32 %v564_v9, %v495_v14  ;;  %v749_v27 = vpop.permute.xlu2 %748 }
 0x173   : > { %v606_v25 = vadd.f32 %v605_v10, %v495_v14 }
 0x174   : > { %v624_v32 = vmax.f32 %v565_v23, 0.0  ;;  %v738_v23 = vld [vmem:[%s1411_s7 + $0x8] sm:$0xff] }
 0x175   : > { %v625_v35 = vmax.f32 %v606_v25, 0.0  ;;  %v744_v25 = vpop.permute.xlu1 %743 }
 0x179   : > { %v567_v12 = vpop.f32.mrf.mxu2 }
 0x17a   : > { %v608_v13 = vpop.f32.mrf.mxu3  ;;  %v568_v18 = vadd.f32 %v567_v12, %v500_v11 }
 0x17b   : > { %v609_v21 = vadd.f32 %v608_v13, %v500_v11  ;;  %v641_v11 = vpop.permute.xlu0 %640 }
 0x17c   : > { %v626_v28 = vmax.f32 %v568_v18, 0.0 }
 0x17d   : > { %v627_v30 = vmax.f32 %v609_v21, 0.0 }
 0x181   : > { %v570_v17 = vpop.f32.mrf.mxu2 }
 0x182   : > { %v571_v19 = vadd.f32 %v570_v17, %v505_v8  ;;  %v611_v20 = vpop.f32.mrf.mxu3 }
 0x183   : > { %v612_v22 = vadd.f32 %v611_v20, %v505_v8 }
 0x184   : > { %v628_v24 = vmax.f32 %v571_v19, 0.0 }
 0x185   : > { %v629_v26 = vmax.f32 %v612_v22, 0.0  ;;  %v737_v22 = vld [vmem:[%s1411_s7] sm:$0xff] }
 0x186   : > { %679 = vmatpush.msrb.mxu0 %v628_v24 }
 0x187   : > { %708 = vmatpush.msrb.mxu1 %v629_v26 }
 0x188   : > { %680 = vmatpush.msrb.mxu0 %v626_v28 }
 0x189   : > { %709 = vmatpush.msrb.mxu1 %v627_v30 }
 0x18a   : > { %681 = vmatpush.msrb.mxu0 %v624_v32 }
 0x18b   : > { %710 = vmatpush.msrb.mxu1 %v625_v35 }
 0x18c   : > { %682 = vmatpush.msrb.mxu0 %v622_v37 }
 0x18d   : > { %711 = vmatpush.msrb.mxu1 %v623_v41 }
 0x18e   : > { %683 = vmatpush.msrb.mxu0 %v620_v43 }
 0x18f   : > { %712 = vmatpush.msrb.mxu1 %v621_v45 }
 0x190   : > { %684 = vmatpush.msrb.mxu0 %v618_v47 }
 0x191   : > { %713 = vmatpush.msrb.mxu1 %v619_v49 }
 0x192   : > { %685 = vmatpush.msrb.mxu0 %v616_v50 }
 0x193   : > { %714 = vmatpush.msrb.mxu1 %v617_v51 }
 0x194   : > { %686 = vmatpush.msrb.mxu0 %v614_v52 }
 0x195   : > { %715 = vmatpush.msrb.mxu1 %v615_v54  ;;  %966 = vmatmul.msk.f32.vlgmr.msrb.gmra.mxu0 %vm658_vm3, %v630_v53 }
 0x196   : > { %970 = vmatmul.msk.f32.vlgmr.msrb.gmra.mxu1 %vm658_vm3, %v630_v53 }
 0x19d   : > { %967 = vmatmul.msk.f32.gmra.mxu0 %vm658_vm3, %v631_v55 }
 0x19e   : > { %971 = vmatmul.msk.f32.gmra.mxu1 %vm658_vm3, %v631_v55 }
 0x1a5   : > { %968 = vmatmul.msk.f32.gmra.mxu0 %vm658_vm3, %v632_v56 }
 0x1a6   : > { %972 = vmatmul.msk.f32.gmra.mxu1 %vm658_vm3, %v632_v56 }
 0x1ad   : > { %969 = vmatmul.msk.f32.gmra.mxu0 %vm658_vm3, %v633_v57 }
 0x1ae   : > { %973 = vmatmul.msk.f32.gmra.mxu1 %vm658_vm3, %v633_v57 }
 0x212   : > { %v688_v58 = vpop.f32.mrf.mxu0 }
 0x213   : > { %v717_v59 = vpop.f32.mrf.mxu1  ;;  %v689_v14 = vadd.f32 %v688_v58, %v641_v11 }
 0x214   : > { %v718_v16 = vadd.f32 %v717_v59, %v641_v11 }
 0x215   : > { %v729_v20 = vmax.f32 %v689_v14, 0.0 }
 0x216   : > { %v730_v21 = vmax.f32 %v718_v16, 0.0 }
 0x21a   : > { %v691_v60 = vpop.f32.mrf.mxu0 }
 0x21b   : > { %v720_v61 = vpop.f32.mrf.mxu1  ;;  %v692_v9 = vadd.f32 %v691_v60, %v646_v6 }
 0x21c   : > { %v721_v12 = vadd.f32 %v720_v61, %v646_v6 }
 0x21d   : > { %v731_v18 = vmax.f32 %v692_v9, 0.0 }
 0x21e   : > { %v732_v19 = vmax.f32 %v721_v12, 0.0 }
 0x222   : > { %v694_v62 = vpop.f32.mrf.mxu0 }
 0x223   : > { %v723_v63 = vpop.f32.mrf.mxu1  ;;  %v695_v3 = vadd.f32 %v694_v62, %v651_v1 }
 0x224   : > { %v724_v7 = vadd.f32 %v723_v63, %v651_v1 }
 0x225   : > { %v733_v15 = vmax.f32 %v695_v3, 0.0 }
 0x226   : > { %v734_v17 = vmax.f32 %v724_v7, 0.0 }
 0x22a   : > { %v697_v2 = vpop.f32.mrf.mxu0 }
 0x22b   : > { %v698_v4 = vadd.f32 %v697_v2, %v656_v0  ;;  %v726_v5 = vpop.f32.mrf.mxu1 }
 0x22c   : > { %v727_v8 = vadd.f32 %v726_v5, %v656_v0 }
 0x22d   : > { %v735_v10 = vmax.f32 %v698_v4, 0.0 }
 0x22e   : > { %v736_v13 = vmax.f32 %v727_v8, 0.0 }
 0x22f   : > { %769 = vmatpush.msra.mxu0 %v735_v10  ;;  %984 = vmatpush.msrb.mxu2 %v735_v10 }
 0x230   : > { %792 = vmatpush.msra.mxu1 %v736_v13  ;;  %988 = vmatpush.msrb.mxu3 %v736_v13 }
 0x231   : > { %770 = vmatpush.msra.mxu0 %v733_v15  ;;  %985 = vmatpush.msrb.mxu2 %v733_v15 }
 0x232   : > { %793 = vmatpush.msra.mxu1 %v734_v17  ;;  %989 = vmatpush.msrb.mxu3 %v734_v17 }
 0x233   : > { %771 = vmatpush.msra.mxu0 %v731_v18  ;;  %986 = vmatpush.msrb.mxu2 %v731_v18 }
 0x234   : > { %794 = vmatpush.msra.mxu1 %v732_v19  ;;  %990 = vmatpush.msrb.mxu3 %v732_v19 }
 0x235   : > { %772 = vmatpush.msra.mxu0 %v729_v20  ;;  %987 = vmatpush.msrb.mxu2 %v729_v20 }
 0x236   : > { %795 = vmatpush.msra.mxu1 %v730_v21  ;;  %991 = vmatpush.msrb.mxu3 %v730_v21 }
 0x237   : > { %974 = vmatmul.msk.f32.vlgmr.msra.gmra.mxu0 %vm507_vm2, %v737_v22  ;;  %975 = vmatmul.msk.f32.vlgmr.msrb.gmra.mxu2 %vm507_vm2, %v738_v23 }
 0x238   : > { %976 = vmatmul.msk.f32.vlgmr.msra.gmra.mxu1 %vm507_vm2, %v737_v22  ;;  %977 = vmatmul.msk.f32.vlgmr.msrb.gmra.mxu3 %vm507_vm2, %v738_v23 }
 0x2b4   : > { %v774_v24 = vpop.f32.mrf.mxu0 }
 0x2b5   : > { %v797_v26 = vpop.f32.mrf.mxu1  ;;  %v775_v29 = vadd.f32 %v774_v24, %v744_v25 }
 0x2b6   : > { %v798_v32 = vadd.f32 %v797_v26, %v744_v25 }
 0x2ba   : > { %v777_v28 = vpop.f32.mrf.mxu2 }
 0x2bb   : > { %v778_v30 = vadd.f32 %v777_v28, %v749_v27  ;;  %v800_v31 = vpop.f32.mrf.mxu3 }
 0x2bc   : > { %v801_v33 = vadd.f32 %v800_v31, %v749_v27 }
 0x2bd   : > { %v803_v34 = vmax.f32 %v775_v29, %v778_v30 }
 0x2be   : > { %v810_v35 = vmax.f32 %v798_v32, %v801_v33 }
 0x2bf   : > { %v804_v36 = vrot.slane %v803_v34, 4 }
 0x2c0   : > { %v811_v37 = vrot.slane %v810_v35, 4 }
 0x2c1   : > { %v805_v38 = vmax.f32 %v803_v34, %v804_v36 }
 0x2c2   : > { %v812_v39 = vmax.f32 %v810_v35, %v811_v37 }
 0x2c3   : > { %v806_v40 = vrot.slane %v805_v38, 2 }
 0x2c4   : > { %v813_v41 = vrot.slane %v812_v39, 2 }
 0x2c5   : > { %v807_v42 = vmax.f32 %v805_v38, %v806_v40 }
 0x2c6   : > { %v814_v43 = vmax.f32 %v812_v39, %v813_v41 }
 0x2c7   : > { %v808_v44 = vrot.slane %v807_v42, 1 }
 0x2c8   : > { %v815_v45 = vrot.slane %v814_v43, 1 }
 0x2c9   : > { %v809_v46 = vmax.f32 %v807_v42, %v808_v44 }
 0x2ca   : > { %v816_v47 = vmax.f32 %v814_v43, %v815_v45 }
 0x2cb   : > { %v817_v48 = vsub.f32 %v775_v29, %v809_v46  ;;  %v819_v49 = vsub.f32 %v778_v30, %v809_v46 }
 0x2cc   : > { %v818_v50 = vsub.f32 %v798_v32, %v816_v47  ;;  %v820_v51 = vsub.f32 %v801_v33, %v816_v47 }
 0x2cd   : > { %v821_v52 = vmul.f32 1.442695, %v817_v48  ;;  %v825_v53 = vmul.f32 1.442695, %v819_v49 }
 0x2ce   : > { %v823_v54 = vmul.f32 1.442695, %v818_v50  ;;  %v827_v55 = vmul.f32 1.442695, %v820_v51 }
 0x2cf   : > { %1054 = vpow2.f32 %v821_v52 }
 0x2d0   : > { %1056 = vpow2.f32 %v825_v53 }
 0x2d1   : > { %1058 = vpow2.f32 %v823_v54 }
 0x2d2   : > { %1060 = vpow2.f32 %v827_v55 }
 0x2d5   : > { %v1055_v56 = vpop.eup %1054 }
 0x2d6   : > { %v1057_v57 = vpop.eup %1056 }
 0x2d7   : > { %v1059_v58 = vpop.eup %1058  ;;  %v829_v59 = vadd.f32 %v1057_v57, %v1055_v56 }
 0x2d8   : > { %v1061_v60 = vpop.eup %1060 }
 0x2d9   : > { %v830_v61 = vrot.slane %v829_v59, 4  ;;  %v836_v62 = vadd.f32 %v1061_v60, %v1059_v58 }
 0x2db   : > { %v831_v63 = vadd.f32 %v830_v61, %v829_v59  ;;  %v837_v0 = vrot.slane %v836_v62, 4 }
 0x2dd   : > { %v832_v1 = vrot.slane %v831_v63, 2  ;;  %v838_v2 = vadd.f32 %v837_v0, %v836_v62 }
 0x2df   : > { %v833_v3 = vadd.f32 %v832_v1, %v831_v63  ;;  %v839_v4 = vrot.slane %v838_v2, 2 }
 0x2e1   : > { %v834_v5 = vrot.slane %v833_v3, 1  ;;  %v840_v6 = vadd.f32 %v839_v4, %v838_v2 }
 0x2e3   : > { %v835_v7 = vadd.f32 %v834_v5, %v833_v3  ;;  %v841_v8 = vrot.slane %v840_v6, 1 }
 0x2e5   : > { %1062 = vlog2.f32 %v835_v7  ;;  %v842_v9 = vadd.f32 %v841_v8, %v840_v6 }
 0x2e7   : > { %1064 = vlog2.f32 %v842_v9 }
 0x2eb   : > { %v1063_v10 = vpop.eup %1062 }
 0x2ec   : > { %v844_v11 = vmul.f32 0.6931472, %v1063_v10 }
 0x2ed   : > { %v1065_v12 = vpop.eup %1064 }
 0x2ee   : > { %v847_v13 = vsub.f32 %v817_v48, %v844_v11  ;;  %v849_v14 = vsub.f32 %v819_v49, %v844_v11  ;;  %v846_v15 = vmul.f32 0.6931472, %v1065_v12 }
 0x2f0   : > { %851 = vst [vmem:[%s326_s17] sm:$0xff] %v847_v13  ;;  %v848_v16 = vsub.f32 %v818_v50, %v846_v15  ;;  %v850_v17 = vsub.f32 %v820_v51, %v846_v15 }
 0x2f1   : > { %853 = vst [vmem:[%s326_s17 + $0x10] sm:$0xff] %v849_v14 }
 0x2f2   : > { %852 = vst [vmem:[%s326_s17 + $0x8] sm:$0xff] %v848_v16 }
 0x2f3   : > { %854 = vst [vmem:[%s326_s17 + $0x18] sm:$0xff] %v850_v17 }
 0x2f4   : > { %1093 = shalt.err (!%p1090_p3)
}
 0x2f5   : > { %s1131_s26 = smov 256   ;;  %s1132_s16 = smov 1024  }
 0x2f6   : > { %s1133_s17 = smov 16  }
 0x2f7   : > { %992 = dma.vmem_to_hbm [thread:$0]  (%p1222_p5), %s869_s21, 512, %s871_s22, %s856_s13, %s1131_s26, %s1132_s16, %s1133_s17  }
 0x2f8 PF: > { %p998_p4 = scmp.ge.s32.totalorder %s1128_s12, 2  ;;  %s885_s25 = sand.u32 1, %s1116_s30  }
 0x2f9   : > { %s886_s23 = scalar_lea.sflag [#allocation3], %s885_s25 }
 0x2fa   : > { %p995_p7 = pnand %p998_p4, %p1226_p6 }
 0x2fc   : > { %p996_p8 = pneg %p995_p7 }
 0x2fe   : > { %1111 = dma.done.wait (%p996_p8), %s886_s23, 512  }
 0x2ff   : > { %1113 = vsyncadd (%p996_p8), %s886_s23, 4294966784  ;;  %p19_p9 = scmp.ge.s32.totalorder %s1209_s15, 6   ;;  %s1416_s30 = smov %s1120_s10 }
 0x300   : > { %s1417_s10 = smov %s1124_s11  ;;  %s1418_s11 = smov %s1220_s18 }
 0x301   : > { %s1419_s12 = smov %s1209_s15  ;;  %21 = sbr.rel (!%p19_p9) target bundleno = 3 (0x3), region = 91 }
 0x306   :  { %892 = vsyncpa [#allocation3], 1 }
 0x307   :  { %894 = vsyncpa [#allocation3 + $0x1], 1 }

</bundles_post_ra>
